<compile_context>
chip_gen: v6e
topology: v6e:2x2x1
jax: 0.10.0
libtpu: 0.0.40
codegen_flags: <defaults>
</compile_context>

<pallas_src>
import math
from functools import partial

import jax
import jax.numpy as jnp
from jax.experimental import pallas as pl
from jax.experimental.pallas import tpu as pltpu


def _round_up(x, m):
    return ((x + m - 1) // m) * m


def _pick_tile(n):
    """Adjacency tile edge (multiple of 128, capped at 1024) and padded N."""
    n_p = _round_up(max(n, 1), 128)
    if n_p <= 1024:
        return n_p, n_p
    for t in (1024, 512, 256, 128):
        if n_p % t == 0:
            return t, n_p
    return 128, n_p  # unreachable: n_p is a multiple of 128


def prepare_adj(adj, n_nodes=None):
    """Cast/pad adjacency once. Hoist this out of graph_convolution when the same
    adj is reused across layers so the HBM cast/pad pass is paid a single time."""
    _, N, _ = adj.shape
    _, n_p = _pick_tile(N if n_nodes is None else n_nodes)
    if adj.dtype == jnp.bfloat16 and N == n_p:
        return adj
    if N == n_p:
        # No padding needed: stream f32 directly, the kernel casts per tile
        # (avoids materializing a second [B,N,N] bf16 copy in HBM).
        return adj.astype(jnp.float32)
    return jnp.pad(adj.astype(jnp.bfloat16), ((0, 0), (0, n_p - N), (0, n_p - N)))


def _gcn_kernel_xw(x_ref, adj_ref, w_ref, b_ref, o_ref, acc_ref, *, tk):
    # x_ref:   (N_p, F_in_p)      bf16      resident node features for batch b
    # adj_ref: (TM, TK)           bf16/f32  streamed adjacency tile (b, m, k)
    # w_ref:   (F_in_p, F_out_p)  bf16      resident weight
    # b_ref:   (1, F_out_p)       f32       resident bias
    # o_ref:   (TM, F_out_p)      f32       output tile (resident across k)
    # acc_ref: (TM, F_in_p)       f32       accumulator for adj @ x
    k = pl.program_id(2)
    adj_t = adj_ref[...].astype(jnp.bfloat16)
    x_slab = x_ref[pl.ds(pl.multiple_of(k * tk, 128), tk), :]
    part = jnp.dot(adj_t, x_slab, preferred_element_type=jnp.float32)

    @pl.when(k == 0)
    def _init():
        acc_ref[...] = part

    @pl.when(k > 0)
    def _accum():
        acc_ref[...] += part

    @pl.when(k == pl.num_programs(2) - 1)
    def _finish():
        # bf16 MXU epilogue (inputs were rounded to bf16 upstream anyway),
        # f32 bias add, f32 store.
        y = jnp.dot(acc_ref[...].astype(jnp.bfloat16), w_ref[...],
                    preferred_element_type=jnp.float32)
        o_ref[...] = (y + b_ref[...]).astype(o_ref.dtype)


def _gcn_kernel_support(s_ref, adj_ref, b_ref, o_ref, *, tk):
    # s_ref:   (N_p, F_out_p) bf16      resident support = x @ W for batch b
    # adj_ref: (TM, TK)       bf16/f32  streamed adjacency tile (b, m, k)
    # b_ref:   (1, F_out_p)   f32       resident bias
    # o_ref:   (TM, F_out_p)  f32       accumulated directly (resident across k)
    k = pl.program_id(2)
    adj_t = adj_ref[...].astype(jnp.bfloat16)
    s_slab = s_ref[pl.ds(pl.multiple_of(k * tk, 128), tk), :]
    part = jnp.dot(adj_t, s_slab, preferred_element_type=jnp.float32)

    @pl.when(k == 0)
    def _init():
        o_ref[...] = part

    @pl.when(k > 0)
    def _accum():
        o_ref[...] += part

    @pl.when(k == pl.num_programs(2) - 1)
    def _finish():
        o_ref[...] += b_ref[...]


def graph_convolution(x, adj, weight, bias=None):
    """Ed=0 forward: out[b] = adj[b] @ (x[b] @ W) + bias.

    x: [B, N, F_in] f32; adj: [B, N, N] f32 (or the prepare_adj() form);
    weight: [F_in, F_out]; bias: [F_out] or None. Returns [B, N, F_out] f32.
    Streaming operands are bf16 (the kernel is HBM-bound on adj); accumulation,
    bias add and the output stay f32.
    """
    B, N, F_in = x.shape
    F_in_w, F_out = weight.shape
    assert F_in_w == F_in
    if bias is None:
        bias = jnp.zeros((F_out,), jnp.float32)

    TM, N_p = _pick_tile(N)
    TK = TM
    F_in_p = _round_up(F_in, 128)
    F_out_p = _round_up(F_out, 128)

    # Adjacency: accept raw [B,N,N] or the pre-prepared (padded bf16 / f32) form.
    assert adj.shape[0] == B and adj.shape[1] in (N, N_p)
    already_prepared = (adj.shape[1] == N_p
                        and adj.dtype in (jnp.bfloat16, jnp.float32))
    adj_p = adj if already_prepared else prepare_adj(adj, N)
    adj_bytes = jnp.dtype(adj_p.dtype).itemsize

    b_p = jnp.pad(bias.astype(jnp.float32).reshape(1, F_out),
                  ((0, 0), (0, F_out_p - F_out)))

    fuse_w_late = F_in_p <= F_out_p
    grid = (B, N_p // TM, N_p // TK)

    if fuse_w_late:
        # Accumulate adj @ x; apply W once per output tile in a bf16 epilogue.
        x_p = jnp.pad(x.astype(jnp.bfloat16),
                      ((0, 0), (0, N_p - N), (0, F_in_p - F_in)))
        w_p = jnp.pad(weight.astype(jnp.bfloat16),
                      ((0, F_in_p - F_in), (0, F_out_p - F_out)))
        kernel = partial(_gcn_kernel_xw, tk=TK)
        operands = (x_p, adj_p, w_p, b_p)
        in_specs = [
            # x: resident per batch (fetched once per b, sliced per k in-kernel)
            pl.BlockSpec((pl.Squeezed(), N_p, F_in_p), lambda b, m, k: (b, 0, 0)),
            # adj: streamed (m, k) tile — the dominant HBM stream
            pl.BlockSpec((pl.Squeezed(), TM, TK), lambda b, m, k: (b, m, k)),
            # W, bias: resident, constant-indexed
            pl.BlockSpec((F_in_p, F_out_p), lambda b, m, k: (0, 0)),
            pl.BlockSpec((1, F_out_p), lambda b, m, k: (0, 0)),
        ]
        scratch_shapes = [pltpu.VMEM((TM, F_in_p), jnp.float32)]
        f_stream = F_in_p
        flops = 2 * B * N_p * N_p * F_in_p + 2 * B * N_p * F_in_p * F_out_p
        extra_vmem = TM * F_in_p * 4 + 2 * F_in_p * F_out_p
    else:
        # Precompute support = x @ W once (plain XLA bmm); stream it resident in bf16
        # and accumulate adj @ support straight into the resident output block.
        support = jnp.einsum("bnf,fo->bno", x, weight)
        s_p = jnp.pad(support.astype(jnp.bfloat16),
                      ((0, 0), (0, N_p - N), (0, F_out_p - F_out)))
        kernel = partial(_gcn_kernel_support, tk=TK)
        operands = (s_p, adj_p, b_p)
        in_specs = [
            pl.BlockSpec((pl.Squeezed(), N_p, F_out_p), lambda b, m, k: (b, 0, 0)),
            pl.BlockSpec((pl.Squeezed(), TM, TK), lambda b, m, k: (b, m, k)),
            pl.BlockSpec((1, F_out_p), lambda b, m, k: (0, 0)),
        ]
        scratch_shapes = []
        f_stream = F_out_p
        flops = 2 * B * N_p * N_p * F_out_p
        extra_vmem = 0

    bytes_accessed = (adj_bytes * B * N_p * N_p          # streamed adjacency
                      + 2 * B * N_p * f_stream           # resident x / support (bf16)
                      + 4 * B * N_p * F_out_p            # output (f32)
                      + 2 * F_in_p * F_out_p + 4 * F_out_p)

    vmem_need = (2 * TM * TK * adj_bytes                 # adj double buffer
                 + 2 * N_p * f_stream * 2                # resident stream (bf16) x2 bufs
                 + 2 * TM * F_out_p * 4                  # output tile double buffer
                 + 2 * F_out_p * 4                       # bias
                 + extra_vmem)                           # acc scratch + resident W
    vmem_limit = int(min(max(32 * 1024 * 1024, (vmem_need * 3) // 2),
                         64 * 1024 * 1024))

    grid_spec = pltpu.PrefetchScalarGridSpec(
        num_scalar_prefetch=0,
        grid=grid,
        in_specs=in_specs,
        out_specs=pl.BlockSpec((pl.Squeezed(), TM, F_out_p),
                               lambda b, m, k: (b, m, 0)),
        scratch_shapes=scratch_shapes,
    )

    out_p = pl.pallas_call(
        kernel,
        out_shape=jax.ShapeDtypeStruct((B, N_p, F_out_p), jnp.float32),
        grid_spec=grid_spec,
        compiler_params=pltpu.CompilerParams(
            dimension_semantics=("parallel", "parallel", "arbitrary"),
            vmem_limit_bytes=vmem_limit,
        ),
        cost_estimate=pl.CostEstimate(
            flops=int(flops), transcendentals=0,
            bytes_accessed=int(bytes_accessed)),
    )(*operands)

    return out_p[:, :N, :F_out]


def init_params(key, in_features, out_features):
    # Mirrors reset_parameters(): uniform(-stdv, stdv), stdv = 1/sqrt(out_features)
    stdv = 1.0 / math.sqrt(out_features)
    kw, kb = jax.random.split(key)
    weight = jax.random.uniform(
        kw, (in_features, out_features), jnp.float32, minval=-stdv, maxval=stdv)
    bias = jax.random.uniform(
        kb, (out_features,), jnp.float32, minval=-stdv, maxval=stdv)
    return weight, bias


if __name__ == "__main__":
    def run_case(case_key, B, N, F_in, F_out, use_prepared_adj=False):
        k_x, k_adj, k_p = jax.random.split(case_key, 3)
        x = jax.random.normal(k_x, (B, N, F_in), jnp.float32)
        # Row-normalized dense adjacency (as in the reference forward).
        adj_raw = jax.random.uniform(k_adj, (B, N, N), jnp.float32)
        adj = adj_raw / jnp.sum(adj_raw, axis=-1, keepdims=True)
        weight, bias = init_params(k_p, F_in, F_out)

        adj_in = prepare_adj(adj) if use_prepared_adj else adj
        out = jax.block_until_ready(graph_convolution(x, adj_in, weight, bias))

        # f32 reference (same math as the PyTorch Ed=0 forward). Streaming operands
        # are rounded to bf16 inside the wrapper/kernel -> bf16-appropriate tolerance.
        ref = jnp.einsum("bij,bjk->bik", adj,
                         jnp.einsum("bnf,fo->bno", x, weight)) + bias
        assert out.shape == (B, N, F_out)
        err = jnp.max(jnp.abs(out - ref))
        assert jnp.allclose(out, ref, atol=2e-2, rtol=2e-2), f"max abs err {err}"

    key = jax.random.PRNGKey(0)
    k1, k2, k3 = jax.random.split(key, 3)

    # F_in <= F_out: adj@x accumulation + late bf16 W epilogue (adj prepared/hoisted).
    run_case(k1, B=2, N=16, F_in=8, F_out=32, use_prepared_adj=True)
    # F_in > F_out: precomputed support streamed; accumulate straight into the output.
    run_case(k2, B=2, N=16, F_in=160, F_out=32)
    # N already a multiple of 128: f32 adj streamed and cast per tile in-kernel.
    run_case(k3, B=2, N=128, F_in=64, F_out=96)

    print("KERNEL_OK")
</pallas_src>

<mosaic_0001>
module attributes {stable_mosaic.version = 11 : i64} {
  func.func @_gcn_kernel_xw(%arg0: i32, %arg1: i32, %arg2: i32, %arg3: memref<1x128x128xbf16, #tpu.memory_space<vmem>>, %arg4: memref<1x128x128xbf16, #tpu.memory_space<vmem>>, %arg5: memref<128x128xbf16, #tpu.memory_space<vmem>>, %arg6: memref<1x128xf32, #tpu.memory_space<vmem>>, %arg7: memref<1x128x128xf32, #tpu.memory_space<vmem>>, %arg8: memref<128x128xf32, #tpu.memory_space<vmem>>) attributes {dimension_semantics = [#tpu.dimension_semantics<parallel>, #tpu.dimension_semantics<parallel>, #tpu.dimension_semantics<arbitrary>], iteration_bounds = array<i64: 2, 1, 1>, scalar_prefetch = 0 : i64, scratch_operands = 1 : i64, tpu.core_type = #tpu.core_type<tc>, window_params = [{transform_indices = @transform_0, window_bounds = array<i64: 1, 128, 128>}, {transform_indices = @transform_1, window_bounds = array<i64: 1, 128, 128>}, {pipeline_mode = #tpu.pipeline_mode<synchronous>, transform_indices = @transform_2, window_bounds = array<i64: 128, 128>}, {pipeline_mode = #tpu.pipeline_mode<synchronous>, transform_indices = @transform_3, window_bounds = array<i64: 1, 128>}, {transform_indices = @transform_4, window_bounds = array<i64: 1, 128, 128>}]} {
    %c0 = arith.constant 0 : index
    %c0_0 = arith.constant 0 : index
    %c0_1 = arith.constant 0 : index
    %0 = vector.load %arg4[%c0, %c0_0, %c0_1] : memref<1x128x128xbf16, #tpu.memory_space<vmem>>, vector<1x128x128xbf16>
    %1 = vector.shape_cast %0 : vector<1x128x128xbf16> to vector<128x128xbf16>
    %c128_i32 = arith.constant 128 : i32
    %2 = arith.muli %arg2, %c128_i32 : i32
    %3 = tpu.assume_multiple %2, 128 : i32
    %c0_2 = arith.constant 0 : index
    %4 = arith.index_cast %3 : i32 to index
    %c0_3 = arith.constant 0 : index
    %5 = vector.load %arg3[%c0_2, %4, %c0_3] : memref<1x128x128xbf16, #tpu.memory_space<vmem>>, vector<1x128x128xbf16>
    %6 = vector.shape_cast %5 : vector<1x128x128xbf16> to vector<128x128xbf16>
    %cst = arith.constant dense<0.000000e+00> : vector<128x128xf32>
    %7 = tpu.matmul %1, %6, %cst {dimension_numbers = #tpu.dot_dimension_numbers<[1], [0], [0], [1], [0, 0, 1, 1], [], []>} : vector<128x128xbf16>, vector<128x128xbf16>, vector<128x128xf32> -> vector<128x128xf32>
    %c0_i32 = arith.constant 0 : i32
    %8 = arith.cmpi eq, %arg2, %c0_i32 : i32
    %9 = arith.extui %8 : i1 to i32
    %c0_i32_4 = arith.constant 0 : i32
    %10 = arith.cmpi ne, %9, %c0_i32_4 : i32
    scf.if %10 {
      %c0_9 = arith.constant 0 : index
      %c0_10 = arith.constant 0 : index
      %17 = vector.load %arg8[%c0_9, %c0_10] : memref<128x128xf32, #tpu.memory_space<vmem>>, vector<128x128xf32>
      tpu.vector_store %arg8[%c0_9, %c0_10], %7 {strides = array<i32>} : memref<128x128xf32, #tpu.memory_space<vmem>>, vector<128x128xf32>,
    } else {
    }
    %c0_i32_5 = arith.constant 0 : i32
    %11 = arith.cmpi sgt, %arg2, %c0_i32_5 : i32
    %12 = arith.extui %11 : i1 to i32
    %c0_i32_6 = arith.constant 0 : i32
    %13 = arith.cmpi ne, %12, %c0_i32_6 : i32
    scf.if %13 {
      %c0_9 = arith.constant 0 : index
      %c0_10 = arith.constant 0 : index
      %17 = vector.load %arg8[%c0_9, %c0_10] : memref<128x128xf32, #tpu.memory_space<vmem>>, vector<128x128xf32>
      %18 = arith.addf %17, %7 : vector<128x128xf32>
      %c0_11 = arith.constant 0 : index
      %c0_12 = arith.constant 0 : index
      %19 = vector.load %arg8[%c0_11, %c0_12] : memref<128x128xf32, #tpu.memory_space<vmem>>, vector<128x128xf32>
      tpu.vector_store %arg8[%c0_11, %c0_12], %18 {strides = array<i32>} : memref<128x128xf32, #tpu.memory_space<vmem>>, vector<128x128xf32>,
    } else {
    }
    %c0_i32_7 = arith.constant 0 : i32
    %14 = arith.cmpi eq, %arg2, %c0_i32_7 : i32
    %15 = arith.extui %14 : i1 to i32
    %c0_i32_8 = arith.constant 0 : i32
    %16 = arith.cmpi ne, %15, %c0_i32_8 : i32
    scf.if %16 {
      %c0_9 = arith.constant 0 : index
      %c0_10 = arith.constant 0 : index
      %17 = vector.load %arg8[%c0_9, %c0_10] : memref<128x128xf32, #tpu.memory_space<vmem>>, vector<128x128xf32>
      %18 = arith.truncf %17 : vector<128x128xf32> to vector<128x128xbf16>
      %c0_11 = arith.constant 0 : index
      %c0_12 = arith.constant 0 : index
      %19 = vector.load %arg5[%c0_11, %c0_12] : memref<128x128xbf16, #tpu.memory_space<vmem>>, vector<128x128xbf16>
      %cst_13 = arith.constant dense<0.000000e+00> : vector<128x128xf32>
      %20 = tpu.matmul %18, %19, %cst_13 {dimension_numbers = #tpu.dot_dimension_numbers<[1], [0], [0], [1], [0, 0, 1, 1], [], []>} : vector<128x128xbf16>, vector<128x128xbf16>, vector<128x128xf32> -> vector<128x128xf32>
      %c0_14 = arith.constant 0 : index
      %c0_15 = arith.constant 0 : index
      %21 = vector.load %arg6[%c0_14, %c0_15] : memref<1x128xf32, #tpu.memory_space<vmem>>, vector<1x128xf32>
      %22 = vector.broadcast %21 : vector<1x128xf32> to vector<128x128xf32>
      %23 = arith.addf %20, %22 : vector<128x128xf32>
      %c0_16 = arith.constant 0 : index
      %c0_17 = arith.constant 0 : index
      %c0_18 = arith.constant 0 : index
      %24 = vector.load %arg7[%c0_16, %c0_17, %c0_18] : memref<1x128x128xf32, #tpu.memory_space<vmem>>, vector<1x128x128xf32>
      %25 = vector.shape_cast %24 : vector<1x128x128xf32> to vector<128x128xf32>
      %26 = vector.shape_cast %23 : vector<128x128xf32> to vector<1x128x128xf32>
      tpu.vector_store %arg7[%c0_16, %c0_17, %c0_18], %26 {strides = array<i32>} : memref<1x128x128xf32, #tpu.memory_space<vmem>>, vector<1x128x128xf32>,
    } else {
    }
    return
  }
  func.func @transform_0(%arg0: i32, %arg1: i32, %arg2: i32) -> (i32, i32, i32) {
    %c0_i32 = arith.constant 0 : i32
    %c0_i32_0 = arith.constant 0 : i32
    %c0_i32_1 = arith.constant 0 : i32
    return %arg0, %c0_i32, %c0_i32_0 : i32, i32, i32
  }
  func.func @transform_1(%arg0: i32, %arg1: i32, %arg2: i32) -> (i32, i32, i32) {
    %c0_i32 = arith.constant 0 : i32
    return %arg0, %arg1, %arg2 : i32, i32, i32
  }
  func.func @transform_2(%arg0: i32, %arg1: i32, %arg2: i32) -> (i32, i32) {
    %c0_i32 = arith.constant 0 : i32
    %c0_i32_0 = arith.constant 0 : i32
    %c0_i32_1 = arith.constant 0 : i32
    return %c0_i32, %c0_i32_0 : i32, i32
  }
  func.func @transform_3(%arg0: i32, %arg1: i32, %arg2: i32) -> (i32, i32) {
    %c0_i32 = arith.constant 0 : i32
    %c0_i32_0 = arith.constant 0 : i32
    %c0_i32_1 = arith.constant 0 : i32
    return %c0_i32, %c0_i32_0 : i32, i32
  }
  func.func @transform_4(%arg0: i32, %arg1: i32, %arg2: i32) -> (i32, i32, i32) {
    %c0_i32 = arith.constant 0 : i32
    %c0_i32_0 = arith.constant 0 : i32
    return %arg0, %arg1, %c0_i32 : i32, i32, i32
  }
}

</mosaic_0001>

<bundles_post_ra>
// kernel: tpu_custom_call.1
= control target key start
LH: loop header
LB: loop body
LE: loop exit
PB: predicated region body
PF: predicated region fallthrough
CT: control target
= control target key end

     0   :  { %s1660_s0 = inlined_call_operand.hbm [shape: bf16[2,128,128], index: 0, kind: input, shape index: {}]   ;;  %s1661_s1 = inlined_call_operand.hbm [shape: bf16[2,128,128], index: 1, kind: input, shape index: {}]   ;;  %s1662_s2 = inlined_call_operand.hbm [shape: bf16[128,128], index: 2, kind: input, shape index: {}]   ;;  %s1663_s3 = inlined_call_operand.vmem [shape: f32[1,128], index: 3, kind: input, shape index: {}]   ;;  %s1664_s4 = inlined_call_operand.hbm [shape: f32[2,128,128], index: 4, kind: output, shape index: {}]  }
   0x1   :  { %1671 = sst [smem:[#allocation16_spill]] %s1662_s2 }
   0x2   :  { %9 = vsyncpa [#allocation4], 0 }
   0x3   :  { %11 = vsyncpa [#allocation4 + $0x1], 0 }
   0x4   :  { %12 = vsyncpa [#allocation7], 0 }
   0x5   :  { %14 = vsyncpa [#allocation7 + $0x1], 0 }
   0x6   :  { %15 = vsyncpa [#allocation5], 0 }
   0x7   :  { %17 = vsyncpa [#allocation5 + $0x1], 0  ;;  %s1411_s15 = smov 0   ;;  %s1413_s16 = smov 0  }
   0x8   :  { %s1415_s17 = smov 0   ;;  %s1417_s18 = smov 0  }
   0x9   :  { %s1419_s19 = smov 0   ;;  %s1421_s20 = smov 0  }
   0xa LB: > { %1672 = sst [smem:[#allocation14_spill]] %s1372_s19  ;;  %s1442_s21 = sadd.s32 4294967295, %s1376_s20   ;;  %s1376_s20 = sphi %s1421_s20, %s23_s20   ;;  %s1372_s19 = sphi %s1419_s19, %s1688_s19   ;;  %s1368_s18 = sphi %s1417_s18, %s1687_s18   ;;  %s1364_s17 = sphi %s1415_s17, %s1691_s17   ;;  %s1360_s16 = sphi %s1413_s16, %s1690_s16   ;;  %s1356_s15 = sphi %s1411_s15, %s1689_s15  }
   0xb   : > { %s956_s22 = sadd.s32 4294967294, %s1376_s20   ;;  %p62_p0 = scmp.ne.s32.totalorder %s1360_s16, %s1356_s15 }
   0xc   : > { %p63_p1 = scmp.eq.s32.totalorder %s1442_s21, 0  ;;  %p166_p3 = scmp.eq.s32.totalorder %s956_s22, 1 }
   0xd   : > { %p957_p5 = scmp.ge.s32.totalorder %s1376_s20, 1  ;;  %p173_p7 = scmp.lt.s32.totalorder %s1376_s20, 3 }
   0xe   : > { %p1451_p4 = por %p63_p1, %p62_p0  ;;  %p1456_p6 = por %p166_p3, %p62_p0 }
   0xf   : > { %p1461_p8 = pnand %p957_p5, %p173_p7  ;;  %s1378_s26 = smov [#allocation8]  }
  0x10   : > { %s1674_s24 = scalar_select %p1456_p6, 1, 0 }
  0x11   : > { %s185_s27 = sshll.u32 %s1378_s26, 4  ;;  %p1110_p9 = pneg %p1461_p8  ;;  %s186_s27 = int_to_ptr.vmem [resolvable:$true] %s185_s27 }
  0x12   : > { %s42_s29 = sadd.s32 1, %s1372_s19  ;;  %s1217_s30 = scalar_lea.vmem %s186_s27, 1024 }
  0x13   : > { %p1470_p11 = pnand %p1110_p9, %p63_p1  ;;  %p1218_p13 = scmp.ne.s32.totalorder %s186_s27, %s1217_s30 }
  0x14   : > { %p1225_p5 = scmp.lt.s32.totalorder %s186_s27, %s186_s27  ;;  %p1226_p7 = scmp.lt.s32.totalorder %s1217_s30, %s1217_s30 }
  0x15   : > { %p1208_p12 = pneg %p1470_p11 }
  0x16   : > { %p1227_p2 = por %p1226_p7, %p1225_p5 }
  0x17   : > { %p1220_p0 = pnand %p1218_p13, %p1208_p12 }
  0x19   : > { %p1221_p3 = pneg %p1220_p0 }
  0x1b   : > { %p1228_p6 = pnand %p1227_p2, %p1221_p3 }
  0x1d   : > { %1231 = shalt.err (!%p1228_p6)
}
  0x1e   : > { %s1665_s5 = smov 64   ;;  %s1667_s6 = smov 4  }
  0x1f   : > { %s1677_s2 = sld [smem:[#allocation16_spill]]  ;;  %p44_p2 = scmp.ge.s32.totalorder %s42_s29, 2 }
  0x20   : > { %s49_s9 = sadd.s32 1, %s1364_s17  ;;  %p56_p6 = scmp.ne.s32.totalorder %s1364_s17, %s1360_s16 }
  0x21   : > { %p57_p9 = scmp.eq.s32.totalorder %s1376_s20, 0  ;;  %s1693_s29 = smov (%p44_p2, %s42_s29), 0 }
  0x22   : > { %1678 = sst [smem:[#allocation15_spill]] %s1693_s29  ;;  %p1680_p13 = scmp.eq.s32.totalorder %s1442_s21, 1 }
  0x23   : > { %p1491_p12 = por %p57_p9, %p56_p6  ;;  %s46_s12 = ssub.s32 %s1372_s19, %s1693_s29 }
  0x24   : > { %p1497_p0 = por %p1680_p13, %p56_p6  ;;  %p1126_p3 = scmp.lt.s32.totalorder %s1376_s20, 2 }
  0x25   : > { %1113 = dma.hbm_to_vmem [thread:$0]  (!%p1470_p11), %s1677_s2, 1024, %s186_s27, [#allocation7], %s1665_s5, %s1665_s5, %s1667_s6  }
  0x26   : > { %p47_p11 = scmp.eq.s32.totalorder %s46_s12, 0  ;;  %s202_s13 = sand.u32 1, %s1364_s17  }
  0x27   : > { %s960_s14 = sshll.u32 %s202_s13, 6  ;;  %s1001_s26 = sshll.u32 %s1372_s19, 10 }
  0x28   : > { %s1506_s22 = scalar_select %p47_p11, %s1364_s17, %s49_s9  }
  0x29   : > { %s212_s30 = scalar_lea.hbm %s1660_s0, %s1001_s26  ;;  %s206_s7 = scalar_lea.vmem [#allocation3], %s960_s14 }
  0x2a   : > { %s213_s8 = sshll.u32 %s206_s7, 4  ;;  %p1514_p5 = pnand %p1126_p3, %p1491_p12  ;;  %s214_s8 = int_to_ptr.vmem [resolvable:$true] %s213_s8 }
  0x2b   : > { %s1521_s9 = scalar_lea.hbm %s1661_s1, %s1001_s26  ;;  %s227_s12 = scalar_lea.vmem [#allocation6], %s960_s14 }
  0x2c   : > { %s237_s29 = sshll.u32 %s227_s12, 4  ;;  %s203_s19 = scalar_lea.sflag [#allocation4], %s202_s13  ;;  %s238_s29 = int_to_ptr.vmem [resolvable:$true] %s237_s29 }
  0x2d   : > { %p1234_p7 = pneg %p1514_p5  ;;  %s1245_s27 = scalar_lea.vmem %s214_s8, 1024 }
  0x2e   : > { %p1246_p2 = scmp.ne.s32.totalorder %s214_s8, %s1245_s27  ;;  %s1381_s10 = smov [#allocation3]  }
  0x2f   : > { %s1250_s28 = sshll.u32 %s1381_s10, 4  ;;  %s1251_s28 = int_to_ptr.vmem [resolvable:$false] %s1250_s28 }
  0x30   : > { %p1248_p6 = pnand %p1246_p2, %p1234_p7  ;;  %s1252_s7 = scalar_lea.vmem %s1251_s28, 2048 }
  0x31   : > { %p1253_p12 = scmp.lt.s32.totalorder %s214_s8, %s1251_s28  ;;  %p1254_p13 = scmp.lt.s32.totalorder %s1252_s7, %s1245_s27 }
  0x32   : > { %p1249_p9 = pneg %p1248_p6 }
  0x33   : > { %p1255_p3 = por %p1254_p13, %p1253_p12 }
  0x35   : > { %p1256_p11 = pnand %p1255_p3, %p1249_p9 }
  0x37   : > { %1259 = shalt.err (!%p1256_p11)
}
  0x38   : > { %s1683_s2 = smov 4   ;;  %s1684_s6 = smov 64  }
  0x39   : > { %1117 = dma.hbm_to_vmem [thread:$0]  (!%p1514_p5), %s212_s30, 1024, %s214_s8, %s203_s19, %s1684_s6, %s1684_s6, %s1683_s2  }
  0x3a   : > { %s223_s13 = sand.u32 1, %s1376_s20   ;;  %s1273_s26 = scalar_lea.vmem %s238_s29, 1024 }
  0x3b   : > { %s224_s14 = scalar_lea.sflag [#allocation7], %s223_s13  ;;  %p1274_p2 = scmp.ne.s32.totalorder %s238_s29, %s1273_s26 }
  0x3c   : > { %s1382_s12 = smov [#allocation6]  }
  0x3d   : > { %p1276_p6 = pnand %p1274_p2, %p1234_p7  ;;  %s1278_s27 = sshll.u32 %s1382_s12, 4  ;;  %s1279_s27 = int_to_ptr.vmem [resolvable:$false] %s1278_s27 }
  0x3e   : > { %s1280_s10 = scalar_lea.vmem %s1279_s27, 2048  ;;  %p1281_p9 = scmp.lt.s32.totalorder %s238_s29, %s1279_s27 }
  0x3f   : > { %p1277_p10 = pneg %p1276_p6  ;;  %p1282_p12 = scmp.lt.s32.totalorder %s1280_s10, %s1273_s26 }
  0x41   : > { %p1283_p13 = por %p1282_p12, %p1281_p9 }
  0x43   : > { %p1284_p3 = pnand %p1283_p13, %p1277_p10 }
  0x45   : > { %1287 = shalt.err (!%p1284_p3)
}
  0x46   : > { %1120 = dma.hbm_to_vmem [thread:$0]  (!%p1514_p5), %s1521_s9, 1024, %s238_s29, %s224_s14, %s1684_s6, %s1684_s6, %s1683_s2  }
  0x47   : > { %249 = sbr.rel (%p1461_p8) target bundleno = 556 (0x22c), region = 36  ;;  %s1546_s19 = sand.u32 (!%p1461_p8), 1, %s1360_s16  }
  0x48   : > { %s967_s30 = sshll.u32 (!%p1461_p8), %s1546_s19, 6  ;;  %s252_s8 = scalar_lea.sflag (!%p1461_p8), [#allocation4], %s1546_s19 }
  0x49   : > { %s1550_s28 = scalar_lea.vmem (!%p1461_p8), [#allocation3], %s967_s30 }
  0x4c   : > { %1339 = dma.done.wait (%p1451_p4), %s252_s8, 1024  }
  0x4d   : > { %1341 = vsyncadd (%p1451_p4), %s252_s8, 4294966272  ;;  %s260_s29 = sand.u32 1, %s1442_s21   ;;  %s1557_s5 = scalar_lea.vmem [#allocation6], %s967_s30 }
  0x4e   : > { %s261_s25 = scalar_lea.sflag [#allocation7], %s260_s29 }
  0x4f   : > { %1343 = dma.done.wait (%p1451_p4), %s261_s25, 1024  }
  0x50   : > { %1345 = vsyncadd (%p1451_p4), %s261_s25, 4294966272 }
  0x51   : > { %1347 = dma.done.wait (%p63_p1), [#allocation7], 1024  }
  0x52   : > { %1349 = vsyncadd (%p63_p1), [#allocation7], 4294966272  ;;  %v1182_v0 = vld [vmem:[%s1550_s28 + $0x38] sm:$0xff]   ;;  %v1183_v1 = vld [vmem:[%s1550_s28 + $0x30] sm:$0xff]   ;;  %s970_s21 = sshll.u32 %s1546_s19, 7  ;;  %s1003_s2 = sshll.u32 %s1368_s18, 11 }
  0x53   : > { %1036 = vmatprep.subr.bf16.mxu0 %v1182_v0  ;;  %v1184_v2 = vld [vmem:[%s1550_s28 + $0x28] sm:$0xff]   ;;  %v1185_v3 = vld [vmem:[%s1550_s28 + $0x20] sm:$0xff]   ;;  %v1186_v5 = vld [vmem:[%s1550_s28 + $0x18] sm:$0xff]   ;;  %s1587_s7 = scalar_lea.vmem [#allocation9], %s970_s21  ;;  %s1608_s26 = scalar_lea.hbm %s1664_s4, %s1003_s2 }
  0x54   : > { %1037 = vmatpush3.bf16.msra.mxu0 %v1182_v0  ;;  %v1190_v4 = vld [vmem:[%s1557_s5] sm:$0xff]   ;;  %v1187_v6 = vld [vmem:[%s1550_s28 + $0x10] sm:$0xff]   ;;  %v1198_v7 = vld [vmem:[#allocation8 + $0x38] sm:$0xff]   ;;  %s830_s6 = sshll.u32 %s1587_s7, 4  ;;  %s815_s12 = scalar_lea.sflag [#allocation5], %s1546_s19  ;;  %s1610_s6 = int_to_ptr.vmem [resolvable:$true] %s830_s6 }
  0x55   : > { %1038 = vmatprep.subr.bf16.mxu0 %v1183_v1  ;;  %1052 = vmatprep.mubr.bf16.mxu0 %v1190_v4  ;;  %v1199_v8 = vld [vmem:[#allocation8 + $0x30] sm:$0xff]   ;;  %v1188_v9 = vld [vmem:[%s1550_s28 + $0x8] sm:$0xff]   ;;  %v1189_v11 = vld [vmem:[%s1550_s28] sm:$0xff]   ;;  %s1288_s18 = scalar_lea.vmem %s1610_s6, 2048  ;;  %s1383_s27 = smov [#allocation9]  }
  0x56   : > { %1068 = vmatprep.subr.bf16.mxu1 %v1198_v7  ;;  %v1200_v10 = vld [vmem:[#allocation8 + $0x28] sm:$0xff]   ;;  %v1201_v12 = vld [vmem:[#allocation8 + $0x20] sm:$0xff]   ;;  %v1202_v13 = vld [vmem:[#allocation8 + $0x18] sm:$0xff]   ;;  %p1289_p1 = scmp.ne.s32.totalorder %s1610_s6, %s1288_s18  ;;  %s1292_s10 = sshll.u32 %s1383_s27, 4  ;;  %s1293_s10 = int_to_ptr.vmem [resolvable:$false] %s1292_s10 }
  0x57   : > { %1069 = vmatpush3.bf16.msra.mxu1 %v1198_v7  ;;  %v1191_v14 = vld [vmem:[%s1557_s5 + $0x8] sm:$0xff]   ;;  %v1192_v15 = vld [vmem:[%s1557_s5 + $0x10] sm:$0xff]   ;;  %v1193_v17 = vld [vmem:[%s1557_s5 + $0x18] sm:$0xff]   ;;  %s1294_s30 = scalar_lea.vmem %s1293_s10, 4096  ;;  %p1295_p10 = scmp.lt.s32.totalorder %s1610_s6, %s1293_s10 }
  0x58   : > { %1039 = vmatpush3.bf16.msra.mxu0 %v1183_v1  ;;  %1070 = vmatprep.subr.bf16.mxu1 %v1199_v8  ;;  %v1203_v16 = vld [vmem:[#allocation8 + $0x10] sm:$0xff]   ;;  %v1194_v18 = vld [vmem:[%s1557_s5 + $0x20] sm:$0xff]   ;;  %v1195_v19 = vld [vmem:[%s1557_s5 + $0x28] sm:$0xff]   ;;  %p1290_p4 = pnand %p1289_p1, %p1497_p0  ;;  %p1296_p5 = scmp.lt.s32.totalorder %s1294_s30, %s1288_s18 }
  0x59   : > { %1040 = vmatprep.subr.bf16.mxu0 %v1184_v2  ;;  %v1196_v20 = vld [vmem:[%s1557_s5 + $0x30] sm:$0xff]   ;;  %v1197_v21 = vld [vmem:[%s1557_s5 + $0x38] sm:$0xff]   ;;  %v1204_v22 = vld [vmem:[#allocation8 + $0x8] sm:$0xff]  }
  0x5a   : > { %v1205_v23 = vld [vmem:[#allocation8] sm:$0xff]   ;;  %p1291_p8 = pneg %p1290_p4  ;;  %p1297_p7 = por %p1296_p5, %p1295_p10 }
  0x5b   : > { %1071 = vmatpush3.bf16.msra.mxu1 %v1199_v8  ;;  %v987_v48 = vld [vmem:[%s1663_s3] ss:$0 sm:$0xff] }
  0x5c   : > { %1041 = vmatpush3.bf16.msra.mxu0 %v1184_v2  ;;  %1072 = vmatprep.subr.bf16.mxu1 %v1200_v10  ;;  %p1298_p11 = pnand %p1297_p7, %p1291_p8 }
  0x5d   : > { %1042 = vmatprep.subr.bf16.mxu0 %v1185_v3 }
  0x5f   : > { %1073 = vmatpush3.bf16.msra.mxu1 %v1200_v10 }
  0x60   : > { %1043 = vmatpush3.bf16.msra.mxu0 %v1185_v3  ;;  %1074 = vmatprep.subr.bf16.mxu1 %v1201_v12 }
  0x61   : > { %1044 = vmatprep.subr.bf16.mxu0 %v1186_v5 }
  0x63   : > { %1075 = vmatpush3.bf16.msra.mxu1 %v1201_v12 }
  0x64   : > { %1045 = vmatpush3.bf16.msra.mxu0 %v1186_v5  ;;  %1076 = vmatprep.subr.bf16.mxu1 %v1202_v13 }
  0x65   : > { %1046 = vmatprep.subr.bf16.mxu0 %v1187_v6 }
  0x67   : > { %1077 = vmatpush3.bf16.msra.mxu1 %v1202_v13 }
  0x68   : > { %1047 = vmatpush3.bf16.msra.mxu0 %v1187_v6  ;;  %1078 = vmatprep.subr.bf16.mxu1 %v1203_v16 }
  0x69   : > { %1048 = vmatprep.subr.bf16.mxu0 %v1188_v9 }
  0x6b   : > { %1079 = vmatpush3.bf16.msra.mxu1 %v1203_v16 }
  0x6c   : > { %1049 = vmatpush3.bf16.msra.mxu0 %v1188_v9  ;;  %1080 = vmatprep.subr.bf16.mxu1 %v1204_v22 }
  0x6d   : > { %1050 = vmatprep.subr.bf16.mxu0 %v1189_v11 }
  0x6f   : > { %1081 = vmatpush3.bf16.msra.mxu1 %v1204_v22 }
  0x70   : > { %1051 = vmatpush3.bf16.msra.mxu0 %v1189_v11  ;;  %1082 = vmatprep.subr.bf16.mxu1 %v1205_v23 }
  0x73   : > { %1053 = vmatmul.mubr.bf16.vlgmr.msra.gmra.mxu0 %v1191_v14  ;;  %1083 = vmatpush3.bf16.msra.mxu1 %v1205_v23 }
  0x74   : > { %1056 = vmatprep.mubr.bf16.mxu0 %v1192_v15 }
  0x7b   : > { %1057 = vmatmul.mubr.bf16.gmra.mxu0 %v1193_v17 }
  0x7c   : > { %1060 = vmatprep.mubr.bf16.mxu0 %v1194_v18 }
  0x83   : > { %1061 = vmatmul.mubr.bf16.gmra.mxu0 %v1195_v19 }
  0x84   : > { %1064 = vmatprep.mubr.bf16.mxu0 %v1196_v20 }
  0x8b   : > { %1065 = vmatmul.mubr.bf16.gmra.mxu0 %v1197_v21 }
 0x133   : > { %v1054_v24 = vpop.f32.mrf.mxu0 }
 0x135   : > { %v468_v25 = vpop.f32.mrf.mxu0 }
 0x137   : > { %v1055_v26 = vpop.f32.mrf.mxu0 }
 0x138   : > { %v623_v29 = vpack.c.bf16 %v1055_v26, %v1054_v24 }
 0x139   : > { %v471_v27 = vpop.f32.mrf.mxu0 }
 0x13a   : > { %v622_v28 = vpack.c.bf16 %v471_v27, %v468_v25 }
 0x13b   : > { %v1058_v30 = vpop.f32.mrf.mxu0 }
 0x13c   : > { %1084 = vmatprep.mubr.bf16.mxu1 %v622_v28 }
 0x13d   : > { %v484_v31 = vpop.f32.mrf.mxu0  ;;  %1085 = vmatmul.mubr.bf16.vlgmr.msra.gmra.mxu1 %v623_v29 }
 0x13f   : > { %v1059_v32 = vpop.f32.mrf.mxu0 }
 0x140   : > { %v625_v35 = vpack.c.bf16 %v1059_v32, %v1058_v30 }
 0x141   : > { %v487_v33 = vpop.f32.mrf.mxu0 }
 0x142   : > { %v624_v34 = vpack.c.bf16 %v487_v33, %v484_v31 }
 0x143   : > { %v1062_v36 = vpop.f32.mrf.mxu0 }
 0x144   : > { %1088 = vmatprep.mubr.bf16.mxu1 %v624_v34 }
 0x145   : > { %v500_v37 = vpop.f32.mrf.mxu0  ;;  %1089 = vmatmul.mubr.bf16.gmra.mxu1 %v625_v35 }
 0x147   : > { %v1063_v38 = vpop.f32.mrf.mxu0 }
 0x148   : > { %v627_v41 = vpack.c.bf16 %v1063_v38, %v1062_v36 }
 0x149   : > { %v503_v39 = vpop.f32.mrf.mxu0 }
 0x14a   : > { %v626_v40 = vpack.c.bf16 %v503_v39, %v500_v37 }
 0x14b   : > { %v1066_v42 = vpop.f32.mrf.mxu0 }
 0x14c   : > { %1092 = vmatprep.mubr.bf16.mxu1 %v626_v40 }
 0x14d   : > { %v516_v43 = vpop.f32.mrf.mxu0  ;;  %1093 = vmatmul.mubr.bf16.gmra.mxu1 %v627_v41 }
 0x14f   : > { %v1067_v44 = vpop.f32.mrf.mxu0 }
 0x150   : > { %v629_v47 = vpack.c.bf16 %v1067_v44, %v1066_v42 }
 0x151   : > { %v519_v45 = vpop.f32.mrf.mxu0 }
 0x152   : > { %v628_v46 = vpack.c.bf16 %v519_v45, %v516_v43 }
 0x154   : > { %1096 = vmatprep.mubr.bf16.mxu1 %v628_v46 }
 0x155   : > { %1097 = vmatmul.mubr.bf16.gmra.mxu1 %v629_v47 }
 0x1fd   : > { %v1086_v49 = vpop.f32.mrf.mxu1 }
 0x1fe   : > { %v744_v50 = vadd.f32 %v1086_v49, %v987_v48 }
 0x1ff   : > { %v735_v51 = vpop.f32.mrf.mxu1 }
 0x200   : > { %800 = vst [vmem:[%s1587_s7 + $0x10] sm:$0xff] %v744_v50  ;;  %v736_v52 = vadd.f32 %v987_v48, %v735_v51 }
 0x201   : > { %v1087_v53 = vpop.f32.mrf.mxu1 }
 0x202   : > { %798 = vst [vmem:[%s1587_s7] sm:$0xff] %v736_v52  ;;  %v747_v54 = vadd.f32 %v1087_v53, %v987_v48 }
 0x203   : > { %v738_v55 = vpop.f32.mrf.mxu1 }
 0x204   : > { %801 = vst [vmem:[%s1587_s7 + $0x18] sm:$0xff] %v747_v54  ;;  %v739_v56 = vadd.f32 %v987_v48, %v738_v55 }
 0x205   : > { %v1090_v57 = vpop.f32.mrf.mxu1 }
 0x206   : > { %799 = vst [vmem:[%s1587_s7 + $0x8] sm:$0xff] %v739_v56  ;;  %v760_v58 = vadd.f32 %v1090_v57, %v987_v48 }
 0x207   : > { %v751_v59 = vpop.f32.mrf.mxu1 }
 0x208   : > { %804 = vst [vmem:[%s1587_s7 + $0x30] sm:$0xff] %v760_v58  ;;  %v752_v60 = vadd.f32 %v987_v48, %v751_v59 }
 0x209   : > { %v1091_v61 = vpop.f32.mrf.mxu1 }
 0x20a   : > { %802 = vst [vmem:[%s1587_s7 + $0x20] sm:$0xff] %v752_v60  ;;  %v763_v62 = vadd.f32 %v1091_v61, %v987_v48 }
 0x20b   : > { %v754_v63 = vpop.f32.mrf.mxu1 }
 0x20c   : > { %805 = vst [vmem:[%s1587_s7 + $0x38] sm:$0xff] %v763_v62  ;;  %v755_v0 = vadd.f32 %v987_v48, %v754_v63 }
 0x20d   : > { %v1094_v1 = vpop.f32.mrf.mxu1 }
 0x20e   : > { %803 = vst [vmem:[%s1587_s7 + $0x28] sm:$0xff] %v755_v0  ;;  %v776_v2 = vadd.f32 %v1094_v1, %v987_v48 }
 0x20f   : > { %v767_v3 = vpop.f32.mrf.mxu1 }
 0x210   : > { %808 = vst [vmem:[%s1587_s7 + $0x50] sm:$0xff] %v776_v2  ;;  %v768_v4 = vadd.f32 %v987_v48, %v767_v3 }
 0x211   : > { %v1095_v5 = vpop.f32.mrf.mxu1 }
 0x212   : > { %806 = vst [vmem:[%s1587_s7 + $0x40] sm:$0xff] %v768_v4  ;;  %v779_v6 = vadd.f32 %v1095_v5, %v987_v48 }
 0x213   : > { %v770_v7 = vpop.f32.mrf.mxu1 }
 0x214   : > { %809 = vst [vmem:[%s1587_s7 + $0x58] sm:$0xff] %v779_v6  ;;  %v771_v8 = vadd.f32 %v987_v48, %v770_v7 }
 0x215   : > { %v1098_v9 = vpop.f32.mrf.mxu1 }
 0x216   : > { %807 = vst [vmem:[%s1587_s7 + $0x48] sm:$0xff] %v771_v8  ;;  %v792_v10 = vadd.f32 %v1098_v9, %v987_v48 }
 0x217   : > { %v783_v11 = vpop.f32.mrf.mxu1 }
 0x218   : > { %812 = vst [vmem:[%s1587_s7 + $0x70] sm:$0xff] %v792_v10  ;;  %v784_v12 = vadd.f32 %v987_v48, %v783_v11 }
 0x219   : > { %v1099_v13 = vpop.f32.mrf.mxu1 }
 0x21a   : > { %810 = vst [vmem:[%s1587_s7 + $0x60] sm:$0xff] %v784_v12  ;;  %v795_v14 = vadd.f32 %v1099_v13, %v987_v48 }
 0x21b   : > { %v786_v15 = vpop.f32.mrf.mxu1 }
 0x21c   : > { %813 = vst [vmem:[%s1587_s7 + $0x78] sm:$0xff] %v795_v14  ;;  %v787_v16 = vadd.f32 %v987_v48, %v786_v15 }
 0x21e   : > { %811 = vst [vmem:[%s1587_s7 + $0x68] sm:$0xff] %v787_v16 }
 0x21f   : > { %1301 = shalt.err (!%p1298_p11)
}
 0x220   : > { %s1302_s8 = scalar_lea.hbm %s1608_s26, 2048  ;;  %s1306_s25 = scalar_lea.hbm %s1664_s4, 4096 }
 0x221   : > { %p1303_p2 = scmp.ne.s32.totalorder %s1608_s26, %s1302_s8  ;;  %p1307_p12 = scmp.lt.s32.totalorder %s1608_s26, %s1664_s4 }
 0x222   : > { %p1308_p13 = scmp.lt.s32.totalorder %s1306_s25, %s1302_s8 }
 0x223   : > { %p1304_p6 = pnand %p1303_p2, %p1497_p0 }
 0x224   : > { %p1309_p3 = por %p1308_p13, %p1307_p12 }
 0x225   : > { %p1305_p9 = pneg %p1304_p6 }
 0x227   : > { %p1310_p1 = pnand %p1309_p3, %p1305_p9 }
 0x229   : > { %1313 = shalt.err (!%p1310_p1)
}
 0x22a   : > { %s1384_s23 = smov 128   ;;  %s1385_s9 = smov 8  }
 0x22b   : > { %1108 = dma.vmem_to_hbm [thread:$0]  (%p1497_p0), %s1610_s6, 2048, %s1608_s26, %s815_s12, %s1384_s23, %s1384_s23, %s1385_s9  }
 0x22c PF: > { %s845_s7 = sand.u32 1, %s1356_s15   ;;  %p1685_p4 = scmp.ne.s32.totalorder %s1674_s24, 0 }
 0x22d   : > { %p1686_p8 = scmp.ge.s32.totalorder %s1376_s20, 2  ;;  %s846_s2 = scalar_lea.sflag [#allocation5], %s845_s7 }
 0x22f   : > { %p1122_p10 = pnand %p1686_p8, %p1685_p4 }
 0x231   : > { %p1123_p5 = pneg %p1122_p10 }
 0x233   : > { %1351 = dma.done.wait (%p1123_p5), %s846_s2, 2048  }
 0x234   : > { %1353 = vsyncadd (%p1123_p5), %s846_s2, 4294965248  ;;  %s23_s20 = sadd.s32 1, %s1376_s20   ;;  %s1687_s18 = sld [smem:[#allocation14_spill]] }
 0x235   : > { %p20_p7 = scmp.ge.s32.totalorder %s23_s20, 4   ;;  %s1688_s19 = sld [smem:[#allocation15_spill]] }
 0x236   : > { %s1689_s15 = smov %s1360_s16  ;;  %s1690_s16 = smov %s1364_s17 }
 0x237   : > { %s1691_s17 = smov %s1506_s22  ;;  %22 = sbr.rel (!%p20_p7) target bundleno = 10 (0xa), region = 111 }
 0x23c   :  { %851 = vsyncpa [#allocation4], 1 }
 0x23d   :  { %853 = vsyncpa [#allocation4 + $0x1], 1 }
 0x23e   :  { %854 = vsyncpa [#allocation7], 1 }
 0x23f   :  { %856 = vsyncpa [#allocation7 + $0x1], 1 }
 0x240   :  { %857 = vsyncpa [#allocation5], 1 }
 0x241   :  { %859 = vsyncpa [#allocation5 + $0x1], 1 }

</bundles_post_ra>
